<compile_context>
chip_gen: v6e
topology: v6e:2x2x1
jax: 0.10.0
libtpu: 0.0.40
codegen_flags: <defaults>
</compile_context>

<pallas_src>
import functools

import jax
import jax.numpy as jnp
from jax.experimental import pallas as pl
from jax.experimental.pallas import tpu as pltpu


def linear_exa_maxent_kernel(d_ref, logits_ref, labels_ref, scal_ref,
                             out_ref, *, top_k):
    # d_ref:      [TB, S] pairwise distances (VMEM tile of the batch)
    # logits_ref: [1, S]  model_prediction_logits (VMEM, resident across tiles)
    # labels_ref: [1, S]  model_true_labels       (VMEM, resident across tiles)
    # scal_ref:   [3]     (gamma, bias, temperature) in SMEM
    # out_ref:    [TB, 1] weighted_approximation + bias
    TB, S = d_ref.shape

    gamma = scal_ref[0]
    bias = scal_ref[1]
    inv_temp = 1.0 / scal_ref[2]                       # hoisted scalar reciprocal

    d = d_ref[...].astype(jnp.float32)                 # [TB, S]
    # Precompute the per-exemplar term once: one EUP tanh pass + one VPU fma.
    term = jnp.tanh(logits_ref[...].astype(jnp.float32)) \
        + gamma * labels_ref[...].astype(jnp.float32)  # [1, S], broadcasts over TB

    col = jax.lax.broadcasted_iota(jnp.int32, (TB, S), 1)

    d_work = d
    sel = jnp.zeros((TB, S), dtype=jnp.float32)        # selection mask of the k minima
    m0 = None                                          # smallest selected distance per row

    # top_k is small and static -> unrolled Python loop.
    # Per step: 2 XLU lane-reductions (min value + tie-break index), VPU compares.
    for kstep in range(top_k):
        m = jnp.min(d_work, axis=1, keepdims=True)                      # [TB, 1]
        cand = d_work == m
        # tie-break: smallest column index among candidates (exact-duplicate safe)
        idx = jnp.min(jnp.where(cand, col, S), axis=1, keepdims=True)   # [TB, 1]
        onehot = col == idx                                             # [TB, S] bool
        sel = jnp.where(onehot, 1.0, sel)
        if kstep == 0:
            m0 = m
        # mask out the selected exemplar for the next iteration (scalar inf const)
        d_work = jnp.where(onehot, jnp.inf, d_work)

    # Weighted aggregation once at the end.
    # Shift by m0 (per-row min): cancels exactly in the normalization, and
    # guarantees w_den >= 1 (the nearest exemplar contributes exp(0) = 1).
    w_all = sel * jnp.exp((m0 - d) * inv_temp)                          # [TB, S]
    w_den = jnp.sum(w_all, axis=1, keepdims=True)                       # [TB, 1]
    w_num = jnp.sum(w_all * term, axis=1, keepdims=True)                # [TB, 1]

    # TODO(synk): for very large batches a lane-dense output layout ([tiles, TB])
    # would avoid masked single-lane stores; irrelevant at demo sizes.
    out_ref[...] = w_num / w_den + bias


def _pick_batch_tile(B, S):
    # Keep the double-buffered [TB, S] f32 input tile under ~16 MiB so it fits
    # comfortably inside v7x's smaller VMEM (64 MiB phys / 32 MiB default scoped)
    # as well as v5e/v6e, while staying as large as possible (per-step overhead).
    vmem_budget = 16 * 1024 * 1024
    max_tb = max(8, vmem_budget // (2 * 4 * S))
    for tb in (512, 256, 128, 64, 32, 16, 8):
        if tb <= max_tb and B % tb == 0:
            return tb
    return B  # block == full array dim is always a legal block shape


def linear_exa_forward(pairwise_distances, prediction_logits, true_labels,
                       gamma, bias, temperature, *, top_k):
    B, S = pairwise_distances.shape
    logits2d = prediction_logits.reshape(1, S).astype(jnp.float32)
    labels2d = true_labels.reshape(1, S).astype(jnp.float32)
    scalars = jnp.concatenate([
        gamma.reshape(1), bias.reshape(1), temperature.reshape(1)
    ]).astype(jnp.float32)                              # [3] -> SMEM

    tb = _pick_batch_tile(B, S)
    grid = (pl.cdiv(B, tb),)

    kernel = functools.partial(linear_exa_maxent_kernel, top_k=top_k)

    out = pl.pallas_call(
        kernel,
        out_shape=jax.ShapeDtypeStruct((B, 1), jnp.float32),
        grid=grid,
        in_specs=[
            pl.BlockSpec((tb, S), lambda i: (i, 0)),    # distance rows: tiled over batch
            pl.BlockSpec((1, S), lambda i: (0, 0)),     # logits: resident
            pl.BlockSpec((1, S), lambda i: (0, 0)),     # labels: resident
            pl.BlockSpec(memory_space=pltpu.MemorySpace.SMEM),  # packed scalars
        ],
        out_specs=pl.BlockSpec((tb, 1), lambda i: (i, 0)),
        compiler_params=pltpu.CompilerParams(
            dimension_semantics=("parallel",)),         # megacore sharding on v7x
    )(pairwise_distances.astype(jnp.float32), logits2d, labels2d, scalars)
    return out[:, 0]


def reference_forward(pairwise_distances, prediction_logits, true_labels,
                      gamma, bias, temperature, *, top_k):
    # pure-JAX reference mirroring the PyTorch forward (MODEL_KNN_MAXENT)
    neg_top, idx = jax.lax.top_k(-pairwise_distances, top_k)
    top_d = -neg_top
    g_logits = prediction_logits[idx]
    g_labels = true_labels[idx]
    w = jnp.exp(-top_d / temperature[0])
    w = w / jnp.sum(w, axis=1, keepdims=True)
    term = jnp.tanh(g_logits) + gamma[0] * g_labels
    return jnp.sum(w * term, axis=1) + bias[0]


if __name__ == "__main__":
    # module hyper-parameters (deterministic, in-script)
    SUPPORT_SIZE = 256
    TOP_K = 8
    BATCH = 8
    model_temperature_init_value = 1.5
    model_bias_init_value = 0.1
    model_gamma_init_value = 0.75

    key = jax.random.PRNGKey(0)
    k_d, k_logits, k_labels = jax.random.split(key, 3)

    # inputs / registered buffers (set deterministically; normally filled via
    # update_model_prediction_logits / update_model_true_labels)
    pairwise_distances = jax.random.uniform(
        k_d, (BATCH, SUPPORT_SIZE), dtype=jnp.float32, minval=0.0, maxval=4.0)
    prediction_logits = jax.random.normal(k_logits, (SUPPORT_SIZE,), dtype=jnp.float32)
    true_labels = jnp.where(
        jax.random.uniform(k_labels, (SUPPORT_SIZE,)) > 0.5, 1.0, -1.0).astype(jnp.float32)

    gamma = jnp.array([model_gamma_init_value], dtype=jnp.float32)
    bias = jnp.array([model_bias_init_value], dtype=jnp.float32)
    temperature = jnp.array([model_temperature_init_value], dtype=jnp.float32)

    out = linear_exa_forward(pairwise_distances, prediction_logits, true_labels,
                             gamma, bias, temperature, top_k=TOP_K)
    out = jax.block_until_ready(out)

    ref = reference_forward(pairwise_distances, prediction_logits, true_labels,
                            gamma, bias, temperature, top_k=TOP_K)
    assert out.shape == (BATCH,)
    assert jnp.allclose(out, ref, atol=1e-5, rtol=1e-5), (out, ref)

    # TODO(synk): MODEL_KNN_BASIC / MODEL_KNN_LEARNED_WEIGHTING branches and the
    # return_nearest_distances/indexes outputs are not wired into this kernel.
    print("KERNEL_OK")
</pallas_src>

<mosaic_0001>
module attributes {stable_mosaic.version = 11 : i64} {
  func.func @linear_exa_maxent_kernel(%arg0: i32, %arg1: memref<8x256xf32, #tpu.memory_space<vmem>>, %arg2: memref<1x256xf32, #tpu.memory_space<vmem>>, %arg3: memref<1x256xf32, #tpu.memory_space<vmem>>, %arg4: memref<3xf32, #tpu.memory_space<smem>>, %arg5: memref<8x1xf32, #tpu.memory_space<vmem>>) attributes {dimension_semantics = [#tpu.dimension_semantics<parallel>], iteration_bounds = array<i64: 1>, scalar_prefetch = 0 : i64, scratch_operands = 0 : i64, tpu.core_type = #tpu.core_type<tc>, window_params = [{transform_indices = @transform_0, window_bounds = array<i64: 8, 256>}, {pipeline_mode = #tpu.pipeline_mode<synchronous>, transform_indices = @transform_1, window_bounds = array<i64: 1, 256>}, {pipeline_mode = #tpu.pipeline_mode<synchronous>, transform_indices = @transform_2, window_bounds = array<i64: 1, 256>}, {transform_indices = @transform_3, window_bounds = array<i64: 3>}, {transform_indices = @transform_4, window_bounds = array<i64: 8, 1>}]} {
    %c0 = arith.constant 0 : index
    %0 = memref.load %arg4[%c0] : memref<3xf32, #tpu.memory_space<smem>>
    %c1 = arith.constant 1 : index
    %1 = memref.load %arg4[%c1] : memref<3xf32, #tpu.memory_space<smem>>
    %c2 = arith.constant 2 : index
    %2 = memref.load %arg4[%c2] : memref<3xf32, #tpu.memory_space<smem>>
    %cst = arith.constant 1.000000e+00 : f32
    %3 = arith.divf %cst, %2 : f32
    %c0_0 = arith.constant 0 : index
    %c0_1 = arith.constant 0 : index
    %4 = vector.load %arg1[%c0_0, %c0_1] : memref<8x256xf32, #tpu.memory_space<vmem>>, vector<8x256xf32>
    %c0_2 = arith.constant 0 : index
    %c0_3 = arith.constant 0 : index
    %5 = vector.load %arg2[%c0_2, %c0_3] : memref<1x256xf32, #tpu.memory_space<vmem>>, vector<1x256xf32>
    %6 = math.tanh %5 : vector<1x256xf32>
    %c0_4 = arith.constant 0 : index
    %c0_5 = arith.constant 0 : index
    %7 = vector.load %arg3[%c0_4, %c0_5] : memref<1x256xf32, #tpu.memory_space<vmem>>, vector<1x256xf32>
    %8 = vector.broadcast %0 : f32 to vector<1x256xf32>
    %9 = arith.mulf %8, %7 : vector<1x256xf32>
    %10 = arith.addf %6, %9 : vector<1x256xf32>
    %11 = tpu.iota {dimensions = array<i32: 1>} : vector<8x256xi32>
    %cst_6 = arith.constant 0.000000e+00 : f32
    %12 = vector.broadcast %cst_6 : f32 to vector<8x256xf32>
    %cst_7 = arith.constant dense<0x7F800000> : vector<8xf32>
    %13 = vector.multi_reduction <minimumf>, %4, %cst_7 [1] : vector<8x256xf32> to vector<8xf32>
    %14 = vector.shape_cast %13 : vector<8xf32> to vector<8x1xf32>
    %15 = vector.broadcast %14 : vector<8x1xf32> to vector<8x256xf32>
    %16 = arith.cmpf oeq, %4, %15 : vector<8x256xf32>
    %c256_i32 = arith.constant 256 : i32
    %17 = vector.broadcast %c256_i32 : i32 to vector<8x256xi32>
    %18 = arith.select %16, %11, %17 : vector<8x256xi1>, vector<8x256xi32>
    %cst_8 = arith.constant dense<2147483647> : vector<8xi32>
    %19 = vector.multi_reduction <minsi>, %18, %cst_8 [1] : vector<8x256xi32> to vector<8xi32>
    %20 = vector.shape_cast %19 : vector<8xi32> to vector<8x1xi32>
    %21 = vector.broadcast %20 : vector<8x1xi32> to vector<8x256xi32>
    %22 = arith.cmpi eq, %11, %21 : vector<8x256xi32>
    %cst_9 = arith.constant 1.000000e+00 : f32
    %23 = vector.broadcast %cst_9 : f32 to vector<8x256xf32>
    %24 = arith.select %22, %23, %12 : vector<8x256xi1>, vector<8x256xf32>
    %cst_10 = arith.constant 0x7F800000 : f32
    %25 = vector.broadcast %cst_10 : f32 to vector<8x256xf32>
    %26 = arith.select %22, %25, %4 : vector<8x256xi1>, vector<8x256xf32>
    %cst_11 = arith.constant dense<0x7F800000> : vector<8xf32>
    %27 = vector.multi_reduction <minimumf>, %26, %cst_11 [1] : vector<8x256xf32> to vector<8xf32>
    %28 = vector.shape_cast %27 : vector<8xf32> to vector<8x1xf32>
    %29 = vector.broadcast %28 : vector<8x1xf32> to vector<8x256xf32>
    %30 = arith.cmpf oeq, %26, %29 : vector<8x256xf32>
    %c256_i32_12 = arith.constant 256 : i32
    %31 = vector.broadcast %c256_i32_12 : i32 to vector<8x256xi32>
    %32 = arith.select %30, %11, %31 : vector<8x256xi1>, vector<8x256xi32>
    %cst_13 = arith.constant dense<2147483647> : vector<8xi32>
    %33 = vector.multi_reduction <minsi>, %32, %cst_13 [1] : vector<8x256xi32> to vector<8xi32>
    %34 = vector.shape_cast %33 : vector<8xi32> to vector<8x1xi32>
    %35 = vector.broadcast %34 : vector<8x1xi32> to vector<8x256xi32>
    %36 = arith.cmpi eq, %11, %35 : vector<8x256xi32>
    %cst_14 = arith.constant 1.000000e+00 : f32
    %37 = vector.broadcast %cst_14 : f32 to vector<8x256xf32>
    %38 = arith.select %36, %37, %24 : vector<8x256xi1>, vector<8x256xf32>
    %cst_15 = arith.constant 0x7F800000 : f32
    %39 = vector.broadcast %cst_15 : f32 to vector<8x256xf32>
    %40 = arith.select %36, %39, %26 : vector<8x256xi1>, vector<8x256xf32>
    %cst_16 = arith.constant dense<0x7F800000> : vector<8xf32>
    %41 = vector.multi_reduction <minimumf>, %40, %cst_16 [1] : vector<8x256xf32> to vector<8xf32>
    %42 = vector.shape_cast %41 : vector<8xf32> to vector<8x1xf32>
    %43 = vector.broadcast %42 : vector<8x1xf32> to vector<8x256xf32>
    %44 = arith.cmpf oeq, %40, %43 : vector<8x256xf32>
    %c256_i32_17 = arith.constant 256 : i32
    %45 = vector.broadcast %c256_i32_17 : i32 to vector<8x256xi32>
    %46 = arith.select %44, %11, %45 : vector<8x256xi1>, vector<8x256xi32>
    %cst_18 = arith.constant dense<2147483647> : vector<8xi32>
    %47 = vector.multi_reduction <minsi>, %46, %cst_18 [1] : vector<8x256xi32> to vector<8xi32>
    %48 = vector.shape_cast %47 : vector<8xi32> to vector<8x1xi32>
    %49 = vector.broadcast %48 : vector<8x1xi32> to vector<8x256xi32>
    %50 = arith.cmpi eq, %11, %49 : vector<8x256xi32>
    %cst_19 = arith.constant 1.000000e+00 : f32
    %51 = vector.broadcast %cst_19 : f32 to vector<8x256xf32>
    %52 = arith.select %50, %51, %38 : vector<8x256xi1>, vector<8x256xf32>
    %cst_20 = arith.constant 0x7F800000 : f32
    %53 = vector.broadcast %cst_20 : f32 to vector<8x256xf32>
    %54 = arith.select %50, %53, %40 : vector<8x256xi1>, vector<8x256xf32>
    %cst_21 = arith.constant dense<0x7F800000> : vector<8xf32>
    %55 = vector.multi_reduction <minimumf>, %54, %cst_21 [1] : vector<8x256xf32> to vector<8xf32>
    %56 = vector.shape_cast %55 : vector<8xf32> to vector<8x1xf32>
    %57 = vector.broadcast %56 : vector<8x1xf32> to vector<8x256xf32>
    %58 = arith.cmpf oeq, %54, %57 : vector<8x256xf32>
    %c256_i32_22 = arith.constant 256 : i32
    %59 = vector.broadcast %c256_i32_22 : i32 to vector<8x256xi32>
    %60 = arith.select %58, %11, %59 : vector<8x256xi1>, vector<8x256xi32>
    %cst_23 = arith.constant dense<2147483647> : vector<8xi32>
    %61 = vector.multi_reduction <minsi>, %60, %cst_23 [1] : vector<8x256xi32> to vector<8xi32>
    %62 = vector.shape_cast %61 : vector<8xi32> to vector<8x1xi32>
    %63 = vector.broadcast %62 : vector<8x1xi32> to vector<8x256xi32>
    %64 = arith.cmpi eq, %11, %63 : vector<8x256xi32>
    %cst_24 = arith.constant 1.000000e+00 : f32
    %65 = vector.broadcast %cst_24 : f32 to vector<8x256xf32>
    %66 = arith.select %64, %65, %52 : vector<8x256xi1>, vector<8x256xf32>
    %cst_25 = arith.constant 0x7F800000 : f32
    %67 = vector.broadcast %cst_25 : f32 to vector<8x256xf32>
    %68 = arith.select %64, %67, %54 : vector<8x256xi1>, vector<8x256xf32>
    %cst_26 = arith.constant dense<0x7F800000> : vector<8xf32>
    %69 = vector.multi_reduction <minimumf>, %68, %cst_26 [1] : vector<8x256xf32> to vector<8xf32>
    %70 = vector.shape_cast %69 : vector<8xf32> to vector<8x1xf32>
    %71 = vector.broadcast %70 : vector<8x1xf32> to vector<8x256xf32>
    %72 = arith.cmpf oeq, %68, %71 : vector<8x256xf32>
    %c256_i32_27 = arith.constant 256 : i32
    %73 = vector.broadcast %c256_i32_27 : i32 to vector<8x256xi32>
    %74 = arith.select %72, %11, %73 : vector<8x256xi1>, vector<8x256xi32>
    %cst_28 = arith.constant dense<2147483647> : vector<8xi32>
    %75 = vector.multi_reduction <minsi>, %74, %cst_28 [1] : vector<8x256xi32> to vector<8xi32>
    %76 = vector.shape_cast %75 : vector<8xi32> to vector<8x1xi32>
    %77 = vector.broadcast %76 : vector<8x1xi32> to vector<8x256xi32>
    %78 = arith.cmpi eq, %11, %77 : vector<8x256xi32>
    %cst_29 = arith.constant 1.000000e+00 : f32
    %79 = vector.broadcast %cst_29 : f32 to vector<8x256xf32>
    %80 = arith.select %78, %79, %66 : vector<8x256xi1>, vector<8x256xf32>
    %cst_30 = arith.constant 0x7F800000 : f32
    %81 = vector.broadcast %cst_30 : f32 to vector<8x256xf32>
    %82 = arith.select %78, %81, %68 : vector<8x256xi1>, vector<8x256xf32>
    %cst_31 = arith.constant dense<0x7F800000> : vector<8xf32>
    %83 = vector.multi_reduction <minimumf>, %82, %cst_31 [1] : vector<8x256xf32> to vector<8xf32>
    %84 = vector.shape_cast %83 : vector<8xf32> to vector<8x1xf32>
    %85 = vector.broadcast %84 : vector<8x1xf32> to vector<8x256xf32>
    %86 = arith.cmpf oeq, %82, %85 : vector<8x256xf32>
    %c256_i32_32 = arith.constant 256 : i32
    %87 = vector.broadcast %c256_i32_32 : i32 to vector<8x256xi32>
    %88 = arith.select %86, %11, %87 : vector<8x256xi1>, vector<8x256xi32>
    %cst_33 = arith.constant dense<2147483647> : vector<8xi32>
    %89 = vector.multi_reduction <minsi>, %88, %cst_33 [1] : vector<8x256xi32> to vector<8xi32>
    %90 = vector.shape_cast %89 : vector<8xi32> to vector<8x1xi32>
    %91 = vector.broadcast %90 : vector<8x1xi32> to vector<8x256xi32>
    %92 = arith.cmpi eq, %11, %91 : vector<8x256xi32>
    %cst_34 = arith.constant 1.000000e+00 : f32
    %93 = vector.broadcast %cst_34 : f32 to vector<8x256xf32>
    %94 = arith.select %92, %93, %80 : vector<8x256xi1>, vector<8x256xf32>
    %cst_35 = arith.constant 0x7F800000 : f32
    %95 = vector.broadcast %cst_35 : f32 to vector<8x256xf32>
    %96 = arith.select %92, %95, %82 : vector<8x256xi1>, vector<8x256xf32>
    %cst_36 = arith.constant dense<0x7F800000> : vector<8xf32>
    %97 = vector.multi_reduction <minimumf>, %96, %cst_36 [1] : vector<8x256xf32> to vector<8xf32>
    %98 = vector.shape_cast %97 : vector<8xf32> to vector<8x1xf32>
    %99 = vector.broadcast %98 : vector<8x1xf32> to vector<8x256xf32>
    %100 = arith.cmpf oeq, %96, %99 : vector<8x256xf32>
    %c256_i32_37 = arith.constant 256 : i32
    %101 = vector.broadcast %c256_i32_37 : i32 to vector<8x256xi32>
    %102 = arith.select %100, %11, %101 : vector<8x256xi1>, vector<8x256xi32>
    %cst_38 = arith.constant dense<2147483647> : vector<8xi32>
    %103 = vector.multi_reduction <minsi>, %102, %cst_38 [1] : vector<8x256xi32> to vector<8xi32>
    %104 = vector.shape_cast %103 : vector<8xi32> to vector<8x1xi32>
    %105 = vector.broadcast %104 : vector<8x1xi32> to vector<8x256xi32>
    %106 = arith.cmpi eq, %11, %105 : vector<8x256xi32>
    %cst_39 = arith.constant 1.000000e+00 : f32
    %107 = vector.broadcast %cst_39 : f32 to vector<8x256xf32>
    %108 = arith.select %106, %107, %94 : vector<8x256xi1>, vector<8x256xf32>
    %cst_40 = arith.constant 0x7F800000 : f32
    %109 = vector.broadcast %cst_40 : f32 to vector<8x256xf32>
    %110 = arith.select %106, %109, %96 : vector<8x256xi1>, vector<8x256xf32>
    %cst_41 = arith.constant dense<0x7F800000> : vector<8xf32>
    %111 = vector.multi_reduction <minimumf>, %110, %cst_41 [1] : vector<8x256xf32> to vector<8xf32>
    %112 = vector.shape_cast %111 : vector<8xf32> to vector<8x1xf32>
    %113 = vector.broadcast %112 : vector<8x1xf32> to vector<8x256xf32>
    %114 = arith.cmpf oeq, %110, %113 : vector<8x256xf32>
    %c256_i32_42 = arith.constant 256 : i32
    %115 = vector.broadcast %c256_i32_42 : i32 to vector<8x256xi32>
    %116 = arith.select %114, %11, %115 : vector<8x256xi1>, vector<8x256xi32>
    %cst_43 = arith.constant dense<2147483647> : vector<8xi32>
    %117 = vector.multi_reduction <minsi>, %116, %cst_43 [1] : vector<8x256xi32> to vector<8xi32>
    %118 = vector.shape_cast %117 : vector<8xi32> to vector<8x1xi32>
    %119 = vector.broadcast %118 : vector<8x1xi32> to vector<8x256xi32>
    %120 = arith.cmpi eq, %11, %119 : vector<8x256xi32>
    %cst_44 = arith.constant 1.000000e+00 : f32
    %121 = vector.broadcast %cst_44 : f32 to vector<8x256xf32>
    %122 = arith.select %120, %121, %108 : vector<8x256xi1>, vector<8x256xf32>
    %123 = vector.broadcast %14 : vector<8x1xf32> to vector<8x256xf32>
    %124 = arith.subf %123, %4 : vector<8x256xf32>
    %125 = vector.broadcast %3 : f32 to vector<8x256xf32>
    %126 = arith.mulf %124, %125 : vector<8x256xf32>
    %127 = math.exp %126 : vector<8x256xf32>
    %128 = arith.mulf %122, %127 : vector<8x256xf32>
    %cst_45 = arith.constant dense<0.000000e+00> : vector<8xf32>
    %129 = vector.multi_reduction <add>, %128, %cst_45 [1] : vector<8x256xf32> to vector<8xf32>
    %130 = vector.shape_cast %129 : vector<8xf32> to vector<8x1xf32>
    %131 = vector.broadcast %10 : vector<1x256xf32> to vector<8x256xf32>
    %132 = arith.mulf %128, %131 : vector<8x256xf32>
    %cst_46 = arith.constant dense<0.000000e+00> : vector<8xf32>
    %133 = vector.multi_reduction <add>, %132, %cst_46 [1] : vector<8x256xf32> to vector<8xf32>
    %134 = vector.shape_cast %133 : vector<8xf32> to vector<8x1xf32>
    %135 = arith.divf %134, %130 : vector<8x1xf32>
    %136 = vector.broadcast %1 : f32 to vector<8x1xf32>
    %137 = arith.addf %135, %136 : vector<8x1xf32>
    %c0_47 = arith.constant 0 : index
    %c0_48 = arith.constant 0 : index
    %138 = vector.load %arg5[%c0_47, %c0_48] : memref<8x1xf32, #tpu.memory_space<vmem>>, vector<8x1xf32>
    tpu.vector_store %arg5[%c0_47, %c0_48], %137 {strides = array<i32>} : memref<8x1xf32, #tpu.memory_space<vmem>>, vector<8x1xf32>,
    return
  }
  func.func @transform_0(%arg0: i32) -> (i32, i32) {
    %c0_i32 = arith.constant 0 : i32
    %c0_i32_0 = arith.constant 0 : i32
    return %arg0, %c0_i32 : i32, i32
  }
  func.func @transform_1(%arg0: i32) -> (i32, i32) {
    %c0_i32 = arith.constant 0 : i32
    %c0_i32_0 = arith.constant 0 : i32
    %c0_i32_1 = arith.constant 0 : i32
    return %c0_i32, %c0_i32_0 : i32, i32
  }
  func.func @transform_2(%arg0: i32) -> (i32, i32) {
    %c0_i32 = arith.constant 0 : i32
    %c0_i32_0 = arith.constant 0 : i32
    %c0_i32_1 = arith.constant 0 : i32
    return %c0_i32, %c0_i32_0 : i32, i32
  }
  func.func @transform_3(%arg0: i32) -> i32 {
    %c0_i32 = arith.constant 0 : i32
    %c0_i32_0 = arith.constant 0 : i32
    return %c0_i32 : i32
  }
  func.func @transform_4(%arg0: i32) -> (i32, i32) {
    %c0_i32 = arith.constant 0 : i32
    %c0_i32_0 = arith.constant 0 : i32
    return %arg0, %c0_i32 : i32, i32
  }
}

</mosaic_0001>

<bundles_post_ra>
// kernel: tpu_custom_call.1
= control target key start
LH: loop header
LB: loop body
LE: loop exit
PB: predicated region body
PF: predicated region fallthrough
CT: control target
= control target key end

     0   :  { %9 = vsyncpa [#allocation3], 0  ;;  %s529_s0 = inlined_call_operand.hbm [shape: f32[8,256], index: 0, kind: input, shape index: {}]   ;;  %s530_s1 = inlined_call_operand.hbm [shape: f32[1,256], index: 1, kind: input, shape index: {}]   ;;  %s531_s2 = inlined_call_operand.vmem [shape: f32[1,256], index: 2, kind: input, shape index: {}]   ;;  %s532_s3 = inlined_call_operand.vmem [shape: f32[3], index: 3, kind: input, shape index: {}]   ;;  %s533_s4 = inlined_call_operand.vmem [shape: f32[8,1], index: 4, kind: output, shape index: {}]  }
   0x1   :  { %10 = vsyncpa [#allocation6], 0 }
   0x2   :  { %11 = vsyncpa [#allocation4], 0  ;;  %s420_s15 = smov [#allocation2]   ;;  %s421_s17 = smov [#allocation5]  }
   0x3   :  { %s18_s16 = sshll.u32 %s420_s15, 4  ;;  %s28_s18 = sshll.u32 %s421_s17, 4  ;;  %s19_s16 = int_to_ptr.vmem [resolvable:$true] %s18_s16  ;;  %s29_s18 = int_to_ptr.vmem [resolvable:$true] %s28_s18 }
   0x4   :  { %s370_s19 = scalar_lea.vmem %s19_s16, 256  ;;  %p375_p1 = scmp.lt.s32.totalorder %s19_s16, %s19_s16 }
   0x5   :  { %p371_p0 = scmp.ne.s32.totalorder %s19_s16, %s370_s19  ;;  %p376_p2 = scmp.lt.s32.totalorder %s370_s19, %s370_s19 }
   0x7   :  { %p377_p3 = por %p376_p2, %p375_p1 }
   0x9   :  { %p378_p4 = pnand %p377_p3, %p371_p0 }
   0xb   :  { %381 = shalt.err (!%p378_p4)
}
   0xc   :  { %21 = dma.hbm_to_vmem [thread:$0]  %s529_s0, 256, %s19_s16, [#allocation3]  }
   0xd   :  { %s390_s22 = scalar_lea.vmem %s29_s18, 32  ;;  %p395_p6 = scmp.lt.s32.totalorder %s29_s18, %s29_s18 }
   0xe   :  { %p391_p5 = scmp.ne.s32.totalorder %s29_s18, %s390_s22  ;;  %p396_p7 = scmp.lt.s32.totalorder %s390_s22, %s390_s22 }
  0x10   :  { %p397_p8 = por %p396_p7, %p395_p6 }
  0x12   :  { %p398_p9 = pnand %p397_p8, %p391_p5 }
  0x14   :  { %401 = shalt.err (!%p398_p9)
}
  0x15   :  { %31 = dma.hbm_to_vmem [thread:$0]  %s530_s1, 32, %s29_s18, [#allocation6]  }
  0x16   :  { %s40_s27 = sshll.u32 %s532_s3, 4  ;;  %s41_s27 = int_to_ptr.vmem [resolvable:$true] %s40_s27 }
  0x17   :  { %s402_s28 = scalar_lea.vmem %s41_s27, 16  ;;  %p407_p11 = scmp.lt.s32.totalorder %s41_s27, %s41_s27 }
  0x18   :  { %p403_p10 = scmp.ne.s32.totalorder %s41_s27, %s402_s28  ;;  %p408_p12 = scmp.lt.s32.totalorder %s402_s28, %s402_s28 }
  0x1a   :  { %p409_p13 = por %p408_p12, %p407_p11 }
  0x1c   :  { %p410_p0 = pnand %p409_p13, %p403_p10 }
  0x1e   :  { %413 = shalt.err (!%p410_p0)
}
  0x1f   :  { %s422_s0 = smov [#allocation7]  }
  0x20   :  { %43 = dma.vmem_to_smem %s41_s27, 16, %s422_s0, [#allocation4]  }
  0x21   :  { %414 = dma.done.wait [#allocation3], 256  }
  0x22   :  { %415 = vsyncadd [#allocation3], 4294967040 }
  0x23   :  { %416 = dma.done.wait [#allocation6], 32  }
  0x24   :  { %417 = vsyncadd [#allocation6], 4294967264 }
  0x25   :  { %418 = dma.done.wait [#allocation4], 16  }
  0x26   :  { %419 = vsyncadd [#allocation4], 4294967280 }
  0x27   :  { %53 = sfence }
  0x28   :  { %v458_v0 = vld [vmem:[#allocation2] sm:$0xff]  ;;  %v460_v1 = vld [vmem:[#allocation2 + $0x8] sm:$0xff]  ;;  %s345_s1 = sld [smem:[#allocation7 + $0x2]]  ;;  %v68_v5 = vlaneseq  ;;  %v423_v41 = vmov 0.0  }
  0x29   :  { %v71_v2 = vmin.f32 %v458_v0, %v460_v1  ;;  %s54_s29 = sld [smem:[#allocation7]] }
  0x2a   :  { %v465_v6 = vand.u32 127, %v68_v5 }
  0x2b   :  { %72 = vmin.xlane.f32.xlu0 %v71_v2 }
  0x2c   :  { %v468_v7 = vadd.s32 128, %v465_v6 }
  0x2e   :  { %v57_v3 = vstv %s345_s1 }
  0x2f   :  { %352 = vrcp.f32 %v57_v3 }
  0x3c   :  { %v353_v4 = vpop.eup %352 }
  0x3d   :  { %346 = vpush %v353_v4 }
  0x6e   :  { %s347_s3 = spop %346 }
  0xb4   :  { %v470_v8 = vpop.xlane.xlu0 %72 }
  0xb5   :  { %vm74_vm0 = vcmp.eq.f32.partialorder %v458_v0, %v470_v8  ;;  %vm75_vm1 = vcmp.eq.f32.partialorder %v460_v1, %v470_v8 }
  0xb6   :  { %v76_v9 = vsel %vm74_vm0, %v465_v6, 256  ;;  %v77_v10 = vsel %vm75_vm1, %v468_v7, 256 }
  0xb7   :  { %vm78_vm2 = vcmp.lt.s32.totalorder %v76_v9, %v77_v10 }
  0xb8   :  { %v79_v11 = vsel %vm78_vm2, %v76_v9, %v77_v10 }
  0xb9   :  { %v81_v12 = vshra.s32 %v79_v11, 16  ;;  %v80_v14 = vand.u32 65535, %v79_v11 }
  0xbb   :  { %v83_v13 = vcvt.s32.f32 %v81_v12  ;;  %v82_v16 = vcvt.s32.f32 %v80_v14 }
  0xbd   :  { %84 = vmin.xlane.f32.xlu0 %v83_v13 }
 0x146   :  { %v85_v15 = vpop.xlane.xlu0 %84 }
 0x147   :  { %vm86_vm3 = vcmp.eq.f32.partialorder %v83_v13, %v85_v15  ;;  %v91_v18 = vcvt.f32.s32 %v85_v15 }
 0x148   :  { %v87_v17 = vsel %vm86_vm3, %v82_v16, inf }
 0x149   :  { %88 = vmin.xlane.f32.xlu1 %v87_v17  ;;  %v92_v20 = vshll.u32 %v91_v18, 16 }
 0x1d2   :  { %v89_v19 = vpop.xlane.xlu1 %88 }
 0x1d3   :  { %v90_v21 = vcvt.f32.s32 %v89_v19 }
 0x1d5   :  { %v93_v22 = vadd.s32 %v92_v20, %v90_v21 }
 0x1d7   :  { %vm94_vm4 = vcmp.eq.s32.totalorder %v465_v6, %v93_v22  ;;  %vm95_vm5 = vcmp.eq.s32.totalorder %v468_v7, %v93_v22 }
 0x1d8   :  { %v98_v23 = vsel %vm94_vm4, inf, %v458_v0  ;;  %v99_v24 = vsel %vm95_vm5, inf, %v460_v1  ;;  %v96_v42 = vsel %vm94_vm4, 1.0, %v423_v41  ;;  %v97_v43 = vsel %vm95_vm5, 1.0, %v423_v41 }
 0x1d9   :  { %v100_v25 = vmin.f32 %v98_v23, %v99_v24 }
 0x1db   :  { %101 = vmin.xlane.f32.xlu1 %v100_v25 }
 0x264   :  { %v102_v26 = vpop.xlane.xlu1 %101 }
 0x265   :  { %vm103_vm6 = vcmp.eq.f32.partialorder %v98_v23, %v102_v26  ;;  %vm104_vm7 = vcmp.eq.f32.partialorder %v99_v24, %v102_v26 }
 0x266   :  { %v105_v27 = vsel %vm103_vm6, %v465_v6, 256  ;;  %v106_v28 = vsel %vm104_vm7, %v468_v7, 256 }
 0x267   :  { %vm107_vm8 = vcmp.lt.s32.totalorder %v105_v27, %v106_v28 }
 0x268   :  { %v108_v29 = vsel %vm107_vm8, %v105_v27, %v106_v28 }
 0x269   :  { %v110_v30 = vshra.s32 %v108_v29, 16  ;;  %v109_v32 = vand.u32 65535, %v108_v29 }
 0x26b   :  { %v112_v31 = vcvt.s32.f32 %v110_v30  ;;  %v111_v34 = vcvt.s32.f32 %v109_v32 }
 0x26d   :  { %113 = vmin.xlane.f32.xlu0 %v112_v31 }
 0x2f6   :  { %v114_v33 = vpop.xlane.xlu0 %113 }
 0x2f7   :  { %vm115_vm9 = vcmp.eq.f32.partialorder %v112_v31, %v114_v33  ;;  %v120_v36 = vcvt.f32.s32 %v114_v33 }
 0x2f8   :  { %v116_v35 = vsel %vm115_vm9, %v111_v34, inf }
 0x2f9   :  { %117 = vmin.xlane.f32.xlu1 %v116_v35  ;;  %v121_v38 = vshll.u32 %v120_v36, 16 }
 0x382   :  { %v118_v37 = vpop.xlane.xlu1 %117 }
 0x383   :  { %v119_v39 = vcvt.f32.s32 %v118_v37 }
 0x385   :  { %v122_v40 = vadd.s32 %v121_v38, %v119_v39 }
 0x387   :  { %vm123_vm10 = vcmp.eq.s32.totalorder %v465_v6, %v122_v40  ;;  %vm124_vm11 = vcmp.eq.s32.totalorder %v468_v7, %v122_v40 }
 0x388   :  { %v125_v44 = vsel %vm123_vm10, 1.0, %v96_v42  ;;  %v126_v45 = vsel %vm124_vm11, 1.0, %v97_v43  ;;  %v127_v46 = vsel %vm123_vm10, inf, %v98_v23  ;;  %v128_v47 = vsel %vm124_vm11, inf, %v99_v24 }
 0x389   :  { %v129_v48 = vmin.f32 %v127_v46, %v128_v47 }
 0x38b   :  { %130 = vmin.xlane.f32.xlu0 %v129_v48 }
 0x414   :  { %v131_v49 = vpop.xlane.xlu0 %130 }
 0x415   :  { %vm132_vm12 = vcmp.eq.f32.partialorder %v127_v46, %v131_v49  ;;  %vm133_vm13 = vcmp.eq.f32.partialorder %v128_v47, %v131_v49 }
 0x416   :  { %v134_v50 = vsel %vm132_vm12, %v465_v6, 256  ;;  %v135_v51 = vsel %vm133_vm13, %v468_v7, 256 }
 0x417   :  { %vm136_vm14 = vcmp.lt.s32.totalorder %v134_v50, %v135_v51 }
 0x418   :  { %v137_v52 = vsel %vm136_vm14, %v134_v50, %v135_v51 }
 0x419   :  { %v139_v53 = vshra.s32 %v137_v52, 16  ;;  %v138_v55 = vand.u32 65535, %v137_v52 }
 0x41b   :  { %v141_v54 = vcvt.s32.f32 %v139_v53  ;;  %v140_v57 = vcvt.s32.f32 %v138_v55 }
 0x41d   :  { %142 = vmin.xlane.f32.xlu1 %v141_v54 }
 0x4a6   :  { %v143_v56 = vpop.xlane.xlu1 %142 }
 0x4a7   :  { %vm144_vm15 = vcmp.eq.f32.partialorder %v141_v54, %v143_v56  ;;  %v149_v59 = vcvt.f32.s32 %v143_v56 }
 0x4a8   :  { %v145_v58 = vsel %vm144_vm15, %v140_v57, inf }
 0x4a9   :  { %146 = vmin.xlane.f32.xlu0 %v145_v58  ;;  %v150_v61 = vshll.u32 %v149_v59, 16 }
 0x532   :  { %v147_v60 = vpop.xlane.xlu0 %146 }
 0x533   :  { %v148_v62 = vcvt.f32.s32 %v147_v60 }
 0x535   :  { %v151_v63 = vadd.s32 %v150_v61, %v148_v62 }
 0x537   :  { %vm152_vm0 = vcmp.eq.s32.totalorder %v465_v6, %v151_v63  ;;  %vm153_vm1 = vcmp.eq.s32.totalorder %v468_v7, %v151_v63 }
 0x538   :  { %v154_v2 = vsel %vm152_vm0, 1.0, %v125_v44  ;;  %v155_v3 = vsel %vm153_vm1, 1.0, %v126_v45  ;;  %v156_v4 = vsel %vm152_vm0, inf, %v127_v46  ;;  %v157_v9 = vsel %vm153_vm1, inf, %v128_v47 }
 0x539   :  { %v158_v10 = vmin.f32 %v156_v4, %v157_v9 }
 0x53b   :  { %159 = vmin.xlane.f32.xlu1 %v158_v10 }
 0x5c4   :  { %v160_v11 = vpop.xlane.xlu1 %159 }
 0x5c5   :  { %vm161_vm2 = vcmp.eq.f32.partialorder %v156_v4, %v160_v11  ;;  %vm162_vm3 = vcmp.eq.f32.partialorder %v157_v9, %v160_v11 }
 0x5c6   :  { %v163_v12 = vsel %vm161_vm2, %v465_v6, 256  ;;  %v164_v13 = vsel %vm162_vm3, %v468_v7, 256 }
 0x5c7   :  { %vm165_vm4 = vcmp.lt.s32.totalorder %v163_v12, %v164_v13 }
 0x5c8   :  { %v166_v14 = vsel %vm165_vm4, %v163_v12, %v164_v13 }
 0x5c9   :  { %v168_v15 = vshra.s32 %v166_v14, 16  ;;  %v167_v17 = vand.u32 65535, %v166_v14 }
 0x5cb   :  { %v170_v16 = vcvt.s32.f32 %v168_v15  ;;  %v169_v19 = vcvt.s32.f32 %v167_v17 }
 0x5cd   :  { %171 = vmin.xlane.f32.xlu0 %v170_v16 }
 0x656   :  { %v172_v18 = vpop.xlane.xlu0 %171 }
 0x657   :  { %vm173_vm5 = vcmp.eq.f32.partialorder %v170_v16, %v172_v18  ;;  %v178_v21 = vcvt.f32.s32 %v172_v18 }
 0x658   :  { %v174_v20 = vsel %vm173_vm5, %v169_v19, inf }
 0x659   :  { %175 = vmin.xlane.f32.xlu1 %v174_v20  ;;  %v179_v23 = vshll.u32 %v178_v21, 16 }
 0x6e2   :  { %v176_v22 = vpop.xlane.xlu1 %175 }
 0x6e3   :  { %v177_v24 = vcvt.f32.s32 %v176_v22 }
 0x6e5   :  { %v180_v25 = vadd.s32 %v179_v23, %v177_v24 }
 0x6e7   :  { %vm181_vm6 = vcmp.eq.s32.totalorder %v465_v6, %v180_v25  ;;  %vm182_vm7 = vcmp.eq.s32.totalorder %v468_v7, %v180_v25 }
 0x6e8   :  { %v183_v26 = vsel %vm181_vm6, 1.0, %v154_v2  ;;  %v184_v27 = vsel %vm182_vm7, 1.0, %v155_v3  ;;  %v185_v28 = vsel %vm181_vm6, inf, %v156_v4  ;;  %v186_v29 = vsel %vm182_vm7, inf, %v157_v9 }
 0x6e9   :  { %v187_v30 = vmin.f32 %v185_v28, %v186_v29 }
 0x6eb   :  { %188 = vmin.xlane.f32.xlu0 %v187_v30 }
 0x774   :  { %v189_v31 = vpop.xlane.xlu0 %188 }
 0x775   :  { %vm190_vm8 = vcmp.eq.f32.partialorder %v185_v28, %v189_v31  ;;  %vm191_vm9 = vcmp.eq.f32.partialorder %v186_v29, %v189_v31 }
 0x776   :  { %v192_v32 = vsel %vm190_vm8, %v465_v6, 256  ;;  %v193_v33 = vsel %vm191_vm9, %v468_v7, 256 }
 0x777   :  { %vm194_vm10 = vcmp.lt.s32.totalorder %v192_v32, %v193_v33 }
 0x778   :  { %v195_v34 = vsel %vm194_vm10, %v192_v32, %v193_v33 }
 0x779   :  { %v197_v35 = vshra.s32 %v195_v34, 16  ;;  %v196_v37 = vand.u32 65535, %v195_v34 }
 0x77b   :  { %v199_v36 = vcvt.s32.f32 %v197_v35  ;;  %v198_v39 = vcvt.s32.f32 %v196_v37 }
 0x77d   :  { %200 = vmin.xlane.f32.xlu1 %v199_v36 }
 0x806   :  { %v201_v38 = vpop.xlane.xlu1 %200 }
 0x807   :  { %vm202_vm11 = vcmp.eq.f32.partialorder %v199_v36, %v201_v38  ;;  %v207_v41 = vcvt.f32.s32 %v201_v38 }
 0x808   :  { %v203_v40 = vsel %vm202_vm11, %v198_v39, inf }
 0x809   :  { %204 = vmin.xlane.f32.xlu0 %v203_v40  ;;  %v208_v43 = vshll.u32 %v207_v41, 16 }
 0x892   :  { %v205_v42 = vpop.xlane.xlu0 %204 }
 0x893   :  { %v206_v44 = vcvt.f32.s32 %v205_v42 }
 0x895   :  { %v209_v45 = vadd.s32 %v208_v43, %v206_v44  ;;  %v301_v43 = vsub.f32 %v470_v8, %v458_v0  ;;  %v302_v44 = vsub.f32 %v470_v8, %v460_v1 }
 0x897   :  { %vm210_vm12 = vcmp.eq.s32.totalorder %v465_v6, %v209_v45  ;;  %vm211_vm13 = vcmp.eq.s32.totalorder %v468_v7, %v209_v45  ;;  %v303_v45 = vstv %s347_s3 }
 0x898   :  { %v212_v46 = vsel %vm210_vm12, 1.0, %v183_v26  ;;  %v213_v47 = vsel %vm211_vm13, 1.0, %v184_v27  ;;  %v214_v48 = vsel %vm210_vm12, inf, %v185_v28  ;;  %v215_v49 = vsel %vm211_vm13, inf, %v186_v29 }
 0x899   :  { %v216_v50 = vmin.f32 %v214_v48, %v215_v49 }
 0x89b   :  { %217 = vmin.xlane.f32.xlu1 %v216_v50 }
 0x924   :  { %v218_v51 = vpop.xlane.xlu1 %217 }
 0x925   :  { %vm219_vm14 = vcmp.eq.f32.partialorder %v214_v48, %v218_v51  ;;  %vm220_vm15 = vcmp.eq.f32.partialorder %v215_v49, %v218_v51  ;;  %v64_v51 = vld [vmem:[%s531_s2] sm:$0x3]  ;;  %s344_s2 = sld [smem:[#allocation7 + $0x1]] }
 0x926   :  { %v221_v52 = vsel %vm219_vm14, %v465_v6, 256  ;;  %v222_v53 = vsel %vm220_vm15, %v468_v7, 256 }
 0x927   :  { %vm223_vm0 = vcmp.lt.s32.totalorder %v221_v52, %v222_v53 }
 0x928   :  { %v224_v54 = vsel %vm223_vm0, %v221_v52, %v222_v53  ;;  %v65_v52 = vstv %s54_s29  ;;  %vm335_vm0 = vcmask 7168  }
 0x929   :  { %v226_v55 = vshra.s32 %v224_v54, 16  ;;  %v225_v57 = vand.u32 65535, %v224_v54  ;;  %v66_v0 = vmul.f32 %v65_v52, %v64_v51  ;;  %v317_v54 = vshrl.u32 %v68_v5, 7 }
 0x92b   :  { %v228_v56 = vcvt.s32.f32 %v226_v55  ;;  %v227_v59 = vcvt.s32.f32 %v225_v57 }
 0x92d   :  { %229 = vmin.xlane.f32.xlu0 %v228_v56 }
 0x9b6   :  { %v230_v58 = vpop.xlane.xlu0 %229 }
 0x9b7   :  { %vm231_vm1 = vcmp.eq.f32.partialorder %v228_v56, %v230_v58  ;;  %v236_v61 = vcvt.f32.s32 %v230_v58  ;;  %v318_v58 = vsub.s32 0, %v317_v54 }
 0x9b8   :  { %v232_v60 = vsel %vm231_vm1, %v227_v59, inf  ;;  %v322_v59 = vsub.s32 1, %v317_v54 }
 0x9b9   :  { %233 = vmin.xlane.f32.xlu1 %v232_v60  ;;  %v237_v63 = vshll.u32 %v236_v61, 16 }
 0xa42   :  { %v234_v62 = vpop.xlane.xlu1 %233 }
 0xa43   :  { %v235_v2 = vcvt.f32.s32 %v234_v62 }
 0xa45   :  { %v238_v3 = vadd.s32 %v237_v63, %v235_v2 }
 0xa47   :  { %vm239_vm2 = vcmp.eq.s32.totalorder %v465_v6, %v238_v3  ;;  %vm240_vm3 = vcmp.eq.s32.totalorder %v468_v7, %v238_v3 }
 0xa48   :  { %v243_v4 = vsel %vm239_vm2, inf, %v214_v48  ;;  %v244_v9 = vsel %vm240_vm3, inf, %v215_v49  ;;  %v242_v10 = vsel %vm240_vm3, 1.0, %v213_v47  ;;  %v241_v11 = vsel %vm239_vm2, 1.0, %v212_v46  ;;  %v62_v46 = vld [vmem:[#allocation5] sm:$0x3] }
 0xa49   :  { %v245_v12 = vmin.f32 %v243_v4, %v244_v9  ;;  %v304_v47 = vmul.f32 %v303_v45, %v301_v43  ;;  %v305_v48 = vmul.f32 %v303_v45, %v302_v44  ;;  %354 = vtanh.f32 %v62_v46 }
 0xa4b   :  { %246 = vmin.xlane.f32.xlu0 %v245_v12  ;;  %v306_v49 = vmul.f32 1.442695, %v304_v47  ;;  %v308_v50 = vmul.f32 1.442695, %v305_v48 }
 0xa4d   :  { %356 = vpow2.f32 %v306_v49 }
 0xa4e   :  { %358 = vpow2.f32 %v308_v50 }
 0xa56   :  { %v355_v1 = vpop.eup %354 }
 0xa57   :  { %v67_v57 = vadd.f32 %v355_v1, %v66_v0 }
 0xa59   :  { %v319_v62 = vrot.slane %v67_v57, %v318_v58  ;;  %v323_v63 = vrot.slane %v67_v57, %v322_v59 }
 0xa5a   :  { %v357_v61 = vpop.eup %356 }
 0xa5b   :  { %v359_v2 = vpop.eup %358 }
 0xad4   :  { %v247_v13 = vpop.xlane.xlu0 %246 }
 0xad5   :  { %vm248_vm4 = vcmp.eq.f32.partialorder %v243_v4, %v247_v13  ;;  %vm249_vm5 = vcmp.eq.f32.partialorder %v244_v9, %v247_v13 }
 0xad6   :  { %v250_v14 = vsel %vm248_vm4, %v465_v6, 256  ;;  %v251_v15 = vsel %vm249_vm5, %v468_v7, 256 }
 0xad7   :  { %vm252_vm6 = vcmp.lt.s32.totalorder %v250_v14, %v251_v15 }
 0xad8   :  { %v253_v16 = vsel %vm252_vm6, %v250_v14, %v251_v15 }
 0xad9   :  { %v255_v17 = vshra.s32 %v253_v16, 16  ;;  %v254_v19 = vand.u32 65535, %v253_v16 }
 0xadb   :  { %v257_v18 = vcvt.s32.f32 %v255_v17  ;;  %v256_v21 = vcvt.s32.f32 %v254_v19 }
 0xadd   :  { %258 = vmin.xlane.f32.xlu1 %v257_v18 }
 0xb66   :  { %v259_v20 = vpop.xlane.xlu1 %258 }
 0xb67   :  { %vm260_vm7 = vcmp.eq.f32.partialorder %v257_v18, %v259_v20  ;;  %v265_v23 = vcvt.f32.s32 %v259_v20 }
 0xb68   :  { %v261_v22 = vsel %vm260_vm7, %v256_v21, inf }
 0xb69   :  { %262 = vmin.xlane.f32.xlu0 %v261_v22  ;;  %v266_v25 = vshll.u32 %v265_v23, 16 }
 0xbf2   :  { %v263_v24 = vpop.xlane.xlu0 %262 }
 0xbf3   :  { %v264_v26 = vcvt.f32.s32 %v263_v24 }
 0xbf5   :  { %v267_v27 = vadd.s32 %v266_v25, %v264_v26 }
 0xbf7   :  { %vm268_vm8 = vcmp.eq.s32.totalorder %v465_v6, %v267_v27  ;;  %vm269_vm9 = vcmp.eq.s32.totalorder %v468_v7, %v267_v27 }
 0xbf8   :  { %v271_v28 = vsel %vm269_vm9, 1.0, %v242_v10  ;;  %v272_v29 = vsel %vm268_vm8, inf, %v243_v4  ;;  %v273_v30 = vsel %vm269_vm9, inf, %v244_v9  ;;  %v270_v31 = vsel %vm268_vm8, 1.0, %v241_v11 }
 0xbf9   :  { %v274_v32 = vmin.f32 %v272_v29, %v273_v30 }
 0xbfb   :  { %275 = vmin.xlane.f32.xlu1 %v274_v32 }
 0xc84   :  { %v276_v33 = vpop.xlane.xlu1 %275 }
 0xc85   :  { %vm277_vm10 = vcmp.eq.f32.partialorder %v272_v29, %v276_v33  ;;  %vm278_vm11 = vcmp.eq.f32.partialorder %v273_v30, %v276_v33 }
 0xc86   :  { %v279_v34 = vsel %vm277_vm10, %v465_v6, 256  ;;  %v280_v35 = vsel %vm278_vm11, %v468_v7, 256 }
 0xc87   :  { %vm281_vm12 = vcmp.lt.s32.totalorder %v279_v34, %v280_v35 }
 0xc88   :  { %v282_v36 = vsel %vm281_vm12, %v279_v34, %v280_v35 }
 0xc89   :  { %v284_v37 = vshra.s32 %v282_v36, 16  ;;  %v283_v39 = vand.u32 65535, %v282_v36 }
 0xc8b   :  { %v286_v38 = vcvt.s32.f32 %v284_v37  ;;  %v285_v41 = vcvt.s32.f32 %v283_v39 }
 0xc8d   :  { %287 = vmin.xlane.f32.xlu0 %v286_v38 }
 0xd16   :  { %v288_v40 = vpop.xlane.xlu0 %287 }
 0xd17   :  { %vm289_vm13 = vcmp.eq.f32.partialorder %v286_v38, %v288_v40  ;;  %v294_v53 = vcvt.f32.s32 %v288_v40 }
 0xd18   :  { %v290_v42 = vsel %vm289_vm13, %v285_v41, inf }
 0xd19   :  { %291 = vmin.xlane.f32.xlu1 %v290_v42  ;;  %v295_v8 = vshll.u32 %v294_v53, 16 }
 0xda2   :  { %v292_v55 = vpop.xlane.xlu1 %291 }
 0xda3   :  { %v293_v56 = vcvt.f32.s32 %v292_v55 }
 0xda5   :  { %v296_v60 = vadd.s32 %v295_v8, %v293_v56 }
 0xda7   :  { %vm297_vm14 = vcmp.eq.s32.totalorder %v465_v6, %v296_v60  ;;  %vm298_vm15 = vcmp.eq.s32.totalorder %v468_v7, %v296_v60  ;;  %v333_v6 = vstv %s344_s2 }
 0xda8   :  { %v299_v3 = vsel %vm297_vm14, 1.0, %v270_v31  ;;  %v300_v4 = vsel %vm298_vm15, 1.0, %v271_v28 }
 0xda9   :  { %v310_v9 = vmul.f32 %v357_v61, %v299_v3  ;;  %v311_v5 = vmul.f32 %v359_v2, %v300_v4 }
 0xdab   :  { %v312_v10 = vadd.f32 %v311_v5, %v310_v9  ;;  %v326_v11 = vmul.f32 %v319_v62, %v310_v9  ;;  %v327_v12 = vmul.f32 %v323_v63, %v311_v5 }
 0xdad   :  { %313 = vadd.xlane.f32.xlu0 %v312_v10  ;;  %v328_v13 = vadd.f32 %v327_v12, %v326_v11 }
 0xdaf   :  { %329 = vadd.xlane.f32.xlu1 %v328_v13 }
 0xe36   :  { %v314_v14 = vpop.xlane.xlu0 %313 }
 0xe37   :  { %360 = vrcp.f32 %v314_v14 }
 0xe38   :  { %v330_v16 = vpop.xlane.xlu1 %329 }
 0xe44   :  { %v361_v15 = vpop.eup %360 }
 0xe45   :  { %v332_v7 = vmul.f32 %v361_v15, %v330_v16 }
 0xe47   :  { %v334_v17 = vadd.f32 %v333_v6, %v332_v7 }
 0xe49   :  { %336 = vst.msk [vmem:[%s533_s4] sm:$0xff] %vm335_vm0, %v334_v17 }
 0xe4a   :  { %341 = vsyncpa [#allocation3], 1 }
 0xe4b   :  { %342 = vsyncpa [#allocation6], 1 }
 0xe4c   :  { %343 = vsyncpa [#allocation4], 1 }

</bundles_post_ra>
